<compile_context>
chip_gen: v6e
topology: v6e:2x2x1
jax: 0.10.0
libtpu: 0.0.40
codegen_flags: <defaults>
</compile_context>

<pallas_src>
import functools

import jax
import jax.numpy as jnp
from jax.experimental import pallas as pl
from jax.experimental.pallas import tpu as pltpu


LANE = 128
SUBLANE = 8


def _round_up(x, m):
    return ((x + m - 1) // m) * m


# --------------------------------------------------------------------------
# Kernel
# --------------------------------------------------------------------------
def make_dqn_kernel(num_layers, P, compute_dtype):
    """Kernel factory closed over static layer count, padded width, dtype."""
    w_rows = num_layers * P  # weight rows of the slab; bias rows follow.

    def dqn_kernel(x_ref, p_ref, out_ref):
        h = x_ref[...]  # [M, P] in compute_dtype
        # Static Python loop -> fully unrolled; all slices are static (free).
        for l in range(num_layers):
            w = p_ref[l * P:(l + 1) * P, :]                # [P, P] compute_dtype
            b = p_ref[w_rows + l:w_rows + l + 1, :]        # [1, P]
            # MXU matmul in compute_dtype (bf16 or f32), f32 accumulation.
            acc = jnp.dot(h.astype(compute_dtype), w,
                          preferred_element_type=jnp.float32)
            h = acc + b.astype(jnp.float32)                # f32 bias add (VPU)
            if l < num_layers - 1:
                h = jnp.maximum(h, 0.0)                    # f32 ReLU
        out_ref[...] = h.astype(out_ref.dtype)

    return dqn_kernel


# --------------------------------------------------------------------------
# Parameter packing (run ONCE per parameter update, not per forward call)
# --------------------------------------------------------------------------
def pack_params(params, dtype=jnp.float32):
    """Pack [(W [in,out], b [out]), ...] into one lane-aligned slab.

    Layout (P = all layer dims padded up to a common multiple of 128):
      rows [l*P, (l+1)*P)          : weight of layer l, zero-padded to [P, P]
      rows [L*P, L*P + ceil8(L))   : row L*P + l holds bias of layer l (padded)

    Returns (slab, meta) where meta holds the static shape info the jitted
    forward needs.
    """
    L = len(params)
    dims = [W.shape[0] for W, _ in params] + [W.shape[1] for W, _ in params]
    P = _round_up(max(dims), LANE)
    bias_rows = _round_up(L, SUBLANE)

    slab = jnp.zeros((L * P + bias_rows, P), jnp.float32)
    for l, (W, b) in enumerate(params):
        i, o = W.shape
        slab = slab.at[l * P:l * P + i, :o].set(W.astype(jnp.float32))
        slab = slab.at[L * P + l, :o].set(b.reshape(-1).astype(jnp.float32))

    meta = dict(num_layers=L,
                in_dim=params[0][0].shape[0],
                num_actions=params[-1][0].shape[1])
    return slab.astype(dtype), meta


# --------------------------------------------------------------------------
# Jitted forward: pad -> pallas_call -> slice, all fused in one dispatch
# --------------------------------------------------------------------------
@functools.partial(
    jax.jit,
    static_argnames=("num_layers", "in_dim", "num_actions",
                     "gridless_max_rows", "max_block_m", "out_dtype"))
def dqn_forward(x, slab, *, num_layers, in_dim, num_actions,
                gridless_max_rows=1024, max_block_m=8192,
                out_dtype=jnp.float32):
    """x: [B, in_dim] float; slab: packed params (f32 or bf16)."""
    B = x.shape[0]
    P = slab.shape[1]
    compute_dtype = slab.dtype

    kernel = make_dqn_kernel(num_layers, P, compute_dtype)

    if B <= gridless_max_rows:
        # Small/medium batch: single grid-less call, everything VMEM-resident.
        B_pad = _round_up(max(B, SUBLANE), SUBLANE)
        xp = jnp.zeros((B_pad, P), compute_dtype).at[:B, :in_dim].set(
            x.astype(compute_dtype))
        vmem = pl.BlockSpec(memory_space=pltpu.MemorySpace.VMEM)
        out = pl.pallas_call(
            kernel,
            out_shape=jax.ShapeDtypeStruct((B_pad, P), out_dtype),
            in_specs=[vmem, vmem],
            out_specs=vmem,
        )(xp, slab)
    else:
        # Large batch: as few grid steps as possible (>= 2 so both v7x TCs get
        # work), block_m capped so double-buffered tiles fit scoped VMEM on
        # every generation (8192 rows f32 -> ~16.7 MiB total, < 32 MiB default).
        num_steps = max(2, pl.cdiv(B, max_block_m))
        block_m = _round_up(pl.cdiv(B, num_steps), SUBLANE)
        B_pad = num_steps * block_m
        xp = jnp.zeros((B_pad, P), compute_dtype).at[:B, :in_dim].set(
            x.astype(compute_dtype))
        out = pl.pallas_call(
            kernel,
            out_shape=jax.ShapeDtypeStruct((B_pad, P), out_dtype),
            grid_spec=pltpu.PrefetchScalarGridSpec(
                num_scalar_prefetch=0,
                grid=(num_steps,),
                in_specs=[
                    pl.BlockSpec((block_m, P), lambda i: (i, 0)),
                    # Constant block index -> weight slab stays VMEM-resident.
                    pl.BlockSpec(slab.shape, lambda i: (0, 0)),
                ],
                out_specs=pl.BlockSpec((block_m, P), lambda i: (i, 0)),
            ),
            compiler_params=pltpu.CompilerParams(
                dimension_semantics=("parallel",)),
        )(xp, slab)

    # Lane-dense kernel output; the unpadded slice fuses here under jit.
    return out[:B, :num_actions]


# --------------------------------------------------------------------------
# Init + pure-JAX reference (mirrors the PyTorch module)
# --------------------------------------------------------------------------
def init_params(key, input_size=100, num_actions=4,
                hidden_sizes=(128, 128, 128, 128)):
    """nn.Linear-style U(-1/sqrt(fan_in), 1/sqrt(fan_in)) init.

    Weights are stored transposed vs PyTorch as [in_dim, out_dim] so the kernel
    computes y = x @ W + b directly; biases are [out_dim].
    """
    dims = [input_size] + list(hidden_sizes) + [num_actions]
    params = []
    for in_dim, out_dim in zip(dims[:-1], dims[1:]):
        key, kw, kb = jax.random.split(key, 3)
        bound = 1.0 / jnp.sqrt(jnp.float32(in_dim))
        W = jax.random.uniform(kw, (in_dim, out_dim), jnp.float32, -bound, bound)
        b = jax.random.uniform(kb, (out_dim,), jnp.float32, -bound, bound)
        params.append((W, b))
    return params


def reference_forward(x, params):
    """Pure-JAX reference of the PyTorch forward (for sanity check)."""
    h = x
    for W, b in params[:-1]:
        h = jnp.maximum(h @ W + b, 0.0)
    Wo, bo = params[-1]
    return h @ Wo + bo


if __name__ == "__main__":
    key = jax.random.PRNGKey(0)
    key, kx = jax.random.split(key)

    input_size = 100   # 5x5 board, 4 one-hot channels
    num_actions = 4

    params = init_params(key, input_size=input_size, num_actions=num_actions)

    # Pack the weight slab ONCE (not in the per-call path).
    slab_f32, meta = pack_params(params, dtype=jnp.float32)

    # 1) Small batch -> grid-less single-call path.
    x = jax.random.normal(kx, (8, input_size), jnp.float32)
    out = jax.block_until_ready(dqn_forward(x, slab_f32, **meta))
    ref = reference_forward(x, params)
    assert out.shape == (8, num_actions)
    assert jnp.allclose(out, ref, atol=1e-4, rtol=1e-4)

    # 2) Force the batch-tiled 2-step "parallel" grid path (the path a large
    #    batch would take; both TensorCores on v7x share the two steps).
    key, kx2 = jax.random.split(key)
    x2 = jax.random.normal(kx2, (256, input_size), jnp.float32)
    out2 = jax.block_until_ready(
        dqn_forward(x2, slab_f32, gridless_max_rows=64, **meta))
    ref2 = reference_forward(x2, params)
    assert out2.shape == (256, num_actions)
    assert jnp.allclose(out2, ref2, atol=1e-4, rtol=1e-4)

    # 3) bf16 weights/activations (halves slab + activation DMA on v6e/v7x),
    #    f32 accumulation and f32 bias/ReLU; loose tolerance because inputs are
    #    genuinely truncated to bf16.
    slab_bf16, _ = pack_params(params, dtype=jnp.bfloat16)
    out3 = jax.block_until_ready(dqn_forward(x2, slab_bf16, **meta))
    assert out3.shape == (256, num_actions)
    assert jnp.allclose(out3, ref2, atol=1e-1, rtol=1e-1)

    print("KERNEL_OK")
</pallas_src>

<mosaic_0001>
module attributes {stable_mosaic.version = 11 : i64} {
  func.func @dqn_kernel(%arg0: memref<8x128xf32, #tpu.memory_space<vmem>>, %arg1: memref<648x128xf32, #tpu.memory_space<vmem>>, %arg2: memref<8x128xf32, #tpu.memory_space<vmem>>) attributes {dimension_semantics = [], scalar_prefetch = 0 : i64, scratch_operands = 0 : i64, tpu.core_type = #tpu.core_type<tc>} {
    %c0 = arith.constant 0 : index
    %c0_0 = arith.constant 0 : index
    %0 = vector.load %arg0[%c0, %c0_0] : memref<8x128xf32, #tpu.memory_space<vmem>>, vector<8x128xf32>
    %c0_1 = arith.constant 0 : index
    %c0_2 = arith.constant 0 : index
    %1 = vector.load %arg1[%c0_1, %c0_2] : memref<648x128xf32, #tpu.memory_space<vmem>>, vector<128x128xf32>
    %c640 = arith.constant 640 : index
    %c0_3 = arith.constant 0 : index
    %2 = vector.load %arg1[%c640, %c0_3] : memref<648x128xf32, #tpu.memory_space<vmem>>, vector<1x128xf32>
    %cst = arith.constant dense<0.000000e+00> : vector<8x128xf32>
    %3 = tpu.matmul %0, %1, %cst {dimension_numbers = #tpu.dot_dimension_numbers<[1], [0], [0], [1], [0, 0, 1, 1], [], []>} : vector<8x128xf32>, vector<128x128xf32>, vector<8x128xf32> -> vector<8x128xf32>
    %4 = vector.broadcast %2 : vector<1x128xf32> to vector<8x128xf32>
    %5 = arith.addf %3, %4 : vector<8x128xf32>
    %cst_4 = arith.constant 0.000000e+00 : f32
    %6 = vector.broadcast %cst_4 : f32 to vector<8x128xf32>
    %7 = arith.maximumf %5, %6 : vector<8x128xf32>
    %c128 = arith.constant 128 : index
    %c0_5 = arith.constant 0 : index
    %8 = vector.load %arg1[%c128, %c0_5] : memref<648x128xf32, #tpu.memory_space<vmem>>, vector<128x128xf32>
    %c641 = arith.constant 641 : index
    %c0_6 = arith.constant 0 : index
    %9 = vector.load %arg1[%c641, %c0_6] : memref<648x128xf32, #tpu.memory_space<vmem>>, vector<1x128xf32>
    %cst_7 = arith.constant dense<0.000000e+00> : vector<8x128xf32>
    %10 = tpu.matmul %7, %8, %cst_7 {dimension_numbers = #tpu.dot_dimension_numbers<[1], [0], [0], [1], [0, 0, 1, 1], [], []>} : vector<8x128xf32>, vector<128x128xf32>, vector<8x128xf32> -> vector<8x128xf32>
    %11 = vector.broadcast %9 : vector<1x128xf32> to vector<8x128xf32>
    %12 = arith.addf %10, %11 : vector<8x128xf32>
    %cst_8 = arith.constant 0.000000e+00 : f32
    %13 = vector.broadcast %cst_8 : f32 to vector<8x128xf32>
    %14 = arith.maximumf %12, %13 : vector<8x128xf32>
    %c256 = arith.constant 256 : index
    %c0_9 = arith.constant 0 : index
    %15 = vector.load %arg1[%c256, %c0_9] : memref<648x128xf32, #tpu.memory_space<vmem>>, vector<128x128xf32>
    %c642 = arith.constant 642 : index
    %c0_10 = arith.constant 0 : index
    %16 = vector.load %arg1[%c642, %c0_10] : memref<648x128xf32, #tpu.memory_space<vmem>>, vector<1x128xf32>
    %cst_11 = arith.constant dense<0.000000e+00> : vector<8x128xf32>
    %17 = tpu.matmul %14, %15, %cst_11 {dimension_numbers = #tpu.dot_dimension_numbers<[1], [0], [0], [1], [0, 0, 1, 1], [], []>} : vector<8x128xf32>, vector<128x128xf32>, vector<8x128xf32> -> vector<8x128xf32>
    %18 = vector.broadcast %16 : vector<1x128xf32> to vector<8x128xf32>
    %19 = arith.addf %17, %18 : vector<8x128xf32>
    %cst_12 = arith.constant 0.000000e+00 : f32
    %20 = vector.broadcast %cst_12 : f32 to vector<8x128xf32>
    %21 = arith.maximumf %19, %20 : vector<8x128xf32>
    %c384 = arith.constant 384 : index
    %c0_13 = arith.constant 0 : index
    %22 = vector.load %arg1[%c384, %c0_13] : memref<648x128xf32, #tpu.memory_space<vmem>>, vector<128x128xf32>
    %c643 = arith.constant 643 : index
    %c0_14 = arith.constant 0 : index
    %23 = vector.load %arg1[%c643, %c0_14] : memref<648x128xf32, #tpu.memory_space<vmem>>, vector<1x128xf32>
    %cst_15 = arith.constant dense<0.000000e+00> : vector<8x128xf32>
    %24 = tpu.matmul %21, %22, %cst_15 {dimension_numbers = #tpu.dot_dimension_numbers<[1], [0], [0], [1], [0, 0, 1, 1], [], []>} : vector<8x128xf32>, vector<128x128xf32>, vector<8x128xf32> -> vector<8x128xf32>
    %25 = vector.broadcast %23 : vector<1x128xf32> to vector<8x128xf32>
    %26 = arith.addf %24, %25 : vector<8x128xf32>
    %cst_16 = arith.constant 0.000000e+00 : f32
    %27 = vector.broadcast %cst_16 : f32 to vector<8x128xf32>
    %28 = arith.maximumf %26, %27 : vector<8x128xf32>
    %c512 = arith.constant 512 : index
    %c0_17 = arith.constant 0 : index
    %29 = vector.load %arg1[%c512, %c0_17] : memref<648x128xf32, #tpu.memory_space<vmem>>, vector<128x128xf32>
    %c644 = arith.constant 644 : index
    %c0_18 = arith.constant 0 : index
    %30 = vector.load %arg1[%c644, %c0_18] : memref<648x128xf32, #tpu.memory_space<vmem>>, vector<1x128xf32>
    %cst_19 = arith.constant dense<0.000000e+00> : vector<8x128xf32>
    %31 = tpu.matmul %28, %29, %cst_19 {dimension_numbers = #tpu.dot_dimension_numbers<[1], [0], [0], [1], [0, 0, 1, 1], [], []>} : vector<8x128xf32>, vector<128x128xf32>, vector<8x128xf32> -> vector<8x128xf32>
    %32 = vector.broadcast %30 : vector<1x128xf32> to vector<8x128xf32>
    %33 = arith.addf %31, %32 : vector<8x128xf32>
    %c0_20 = arith.constant 0 : index
    %c0_21 = arith.constant 0 : index
    %34 = vector.load %arg2[%c0_20, %c0_21] : memref<8x128xf32, #tpu.memory_space<vmem>>, vector<8x128xf32>
    tpu.vector_store %arg2[%c0_20, %c0_21], %33 {strides = array<i32>} : memref<8x128xf32, #tpu.memory_space<vmem>>, vector<8x128xf32>,
    return
  }
}

</mosaic_0001>

<bundles_post_ra>
// kernel: dqn_forward.1
= control target key start
LH: loop header
LB: loop body
LE: loop exit
PB: predicated region body
PF: predicated region fallthrough
CT: control target
= control target key end

     0   :  { %7 = vsyncpa [#allocation3], 0  ;;  %s783_s9 = smov [#allocation2]   ;;  %s902_s0 = inlined_call_operand.vmem [shape: f32[8,128], index: 0, kind: input, shape index: {}]   ;;  %s903_s1 = inlined_call_operand.hbm [shape: f32[648,128], index: 1, kind: input, shape index: {}]   ;;  %s904_s2 = inlined_call_operand.vmem [shape: f32[8,128], index: 2, kind: output, shape index: {}]  }
   0x1   :  { %s15_s10 = sshll.u32 %s783_s9, 4  ;;  %s16_s10 = int_to_ptr.vmem [resolvable:$true] %s15_s10 }
   0x2   :  { %s769_s11 = scalar_lea.vmem %s16_s10, 10368  ;;  %p774_p1 = scmp.lt.s32.totalorder %s16_s10, %s16_s10 }
   0x3   :  { %p770_p0 = scmp.ne.s32.totalorder %s16_s10, %s769_s11  ;;  %p775_p2 = scmp.lt.s32.totalorder %s769_s11, %s769_s11 }
   0x5   :  { %p776_p3 = por %p775_p2, %p774_p1 }
   0x7   :  { %p777_p4 = pnand %p776_p3, %p770_p0 }
   0x9   :  { %780 = shalt.err (!%p777_p4)
}
   0xa   :  { %s784_s12 = smov 128   ;;  %s785_s13 = smov 8  }
   0xb   :  { %21 = dma.hbm_to_vmem [thread:$0]  %s903_s1, 10368, %s16_s10, [#allocation3], %s784_s12, %s784_s12, %s785_s13  }
   0xc   :  { %781 = dma.done.wait [#allocation3], 10368  }
   0xd   :  { %782 = vsyncadd [#allocation3], 4294956928  ;;  %v786_v0 = vmov 0.0   ;;  %vm787_vm0 = vmmov 0   ;;  %v41_v1 = vld [vmem:[#allocation2 + $0x78] sm:$0xff]  ;;  %v40_v2 = vld [vmem:[#allocation2 + $0x70] sm:$0xff] }
   0xe   :  { %581 = vmatprep.subr.mxu0 %v786_v0  ;;  %613 = vmatprep.mubr.msk.f32.mxu0 %vm787_vm0, %v786_v0  ;;  %v39_v3 = vld [vmem:[#allocation2 + $0x68] sm:$0xff]  ;;  %v38_v4 = vld [vmem:[#allocation2 + $0x60] sm:$0xff]  ;;  %v133_v5 = vld [vmem:[#allocation2 + $0xf8] sm:$0xff] }
   0xf   :  { %616 = vmatprep.subr.mxu1 %v786_v0  ;;  %648 = vmatprep.mubr.msk.f32.mxu1 %vm787_vm0, %v786_v0  ;;  %v37_v6 = vld [vmem:[#allocation2 + $0x58] sm:$0xff]  ;;  %v132_v7 = vld [vmem:[#allocation2 + $0xf0] sm:$0xff]  ;;  %v131_v8 = vld [vmem:[#allocation2 + $0xe8] sm:$0xff] }
  0x10   :  { %582 = vmatpush3.msra.mxu0 %v41_v1  ;;  %617 = vmatpush3.msra.mxu1 %v133_v5  ;;  %v36_v9 = vld [vmem:[#allocation2 + $0x50] sm:$0xff]  ;;  %v130_v10 = vld [vmem:[#allocation2 + $0xe0] sm:$0xff]  ;;  %v35_v11 = vld [vmem:[#allocation2 + $0x48] sm:$0xff] }
  0x11   :  { %583 = vmatprep.subr.mxu0 %v786_v0  ;;  %618 = vmatprep.subr.mxu1 %v786_v0  ;;  %v129_v12 = vld [vmem:[#allocation2 + $0xd8] sm:$0xff]  ;;  %v34_v13 = vld [vmem:[#allocation2 + $0x40] sm:$0xff]  ;;  %v128_v14 = vld [vmem:[#allocation2 + $0xd0] sm:$0xff] }
  0x12   :  { %584 = vmatpush3.msra.mxu0 %v40_v2  ;;  %619 = vmatpush3.msra.mxu1 %v132_v7  ;;  %v33_v15 = vld [vmem:[#allocation2 + $0x38] sm:$0xff]  ;;  %v127_v16 = vld [vmem:[#allocation2 + $0xc8] sm:$0xff]  ;;  %v32_v17 = vld [vmem:[#allocation2 + $0x30] sm:$0xff] }
  0x13   :  { %585 = vmatprep.subr.mxu0 %v786_v0  ;;  %620 = vmatprep.subr.mxu1 %v786_v0  ;;  %v126_v18 = vld [vmem:[#allocation2 + $0xc0] sm:$0xff]  ;;  %v31_v19 = vld [vmem:[#allocation2 + $0x28] sm:$0xff]  ;;  %v125_v20 = vld [vmem:[#allocation2 + $0xb8] sm:$0xff] }
  0x14   :  { %586 = vmatpush3.msra.mxu0 %v39_v3  ;;  %621 = vmatpush3.msra.mxu1 %v131_v8  ;;  %v30_v21 = vld [vmem:[#allocation2 + $0x20] sm:$0xff]  ;;  %v124_v22 = vld [vmem:[#allocation2 + $0xb0] sm:$0xff]  ;;  %v29_v23 = vld [vmem:[#allocation2 + $0x18] sm:$0xff] }
  0x15   :  { %587 = vmatprep.subr.mxu0 %v786_v0  ;;  %622 = vmatprep.subr.mxu1 %v786_v0  ;;  %v123_v24 = vld [vmem:[#allocation2 + $0xa8] sm:$0xff]  ;;  %v28_v25 = vld [vmem:[#allocation2 + $0x10] sm:$0xff]  ;;  %v122_v26 = vld [vmem:[#allocation2 + $0xa0] sm:$0xff] }
  0x16   :  { %588 = vmatpush3.msra.mxu0 %v38_v4  ;;  %623 = vmatpush3.msra.mxu1 %v130_v10  ;;  %v27_v27 = vld [vmem:[#allocation2 + $0x8] sm:$0xff]  ;;  %v121_v28 = vld [vmem:[#allocation2 + $0x98] sm:$0xff]  ;;  %v26_v29 = vld [vmem:[#allocation2] sm:$0xff] }
  0x17   :  { %589 = vmatprep.subr.mxu0 %v786_v0  ;;  %624 = vmatprep.subr.mxu1 %v786_v0  ;;  %v25_v30 = vld [vmem:[%s902_s0] sm:$0xff]  ;;  %v120_v31 = vld [vmem:[#allocation2 + $0x90] sm:$0xff]  ;;  %v119_v32 = vld [vmem:[#allocation2 + $0x88] sm:$0xff] }
  0x18   :  { %590 = vmatpush3.msra.mxu0 %v37_v6  ;;  %625 = vmatpush3.msra.mxu1 %v129_v12  ;;  %v118_v33 = vld [vmem:[#allocation2 + $0x80] sm:$0xff]  ;;  %v225_v34 = vld [vmem:[#allocation2 + $0x178] sm:$0xff]  ;;  %v224_v35 = vld [vmem:[#allocation2 + $0x170] sm:$0xff] }
  0x19   :  { %591 = vmatprep.subr.mxu0 %v786_v0  ;;  %626 = vmatprep.subr.mxu1 %v786_v0  ;;  %v223_v36 = vld [vmem:[#allocation2 + $0x168] sm:$0xff]  ;;  %v222_v37 = vld [vmem:[#allocation2 + $0x160] sm:$0xff]  ;;  %v221_v38 = vld [vmem:[#allocation2 + $0x158] sm:$0xff] }
  0x1a   :  { %592 = vmatpush3.msra.mxu0 %v36_v9  ;;  %627 = vmatpush3.msra.mxu1 %v128_v14  ;;  %v220_v39 = vld [vmem:[#allocation2 + $0x150] sm:$0xff]  ;;  %v219_v40 = vld [vmem:[#allocation2 + $0x148] sm:$0xff]  ;;  %v218_v41 = vld [vmem:[#allocation2 + $0x140] sm:$0xff] }
  0x1b   :  { %593 = vmatprep.subr.mxu0 %v786_v0  ;;  %628 = vmatprep.subr.mxu1 %v786_v0  ;;  %v217_v42 = vld [vmem:[#allocation2 + $0x138] sm:$0xff]  ;;  %v216_v43 = vld [vmem:[#allocation2 + $0x130] sm:$0xff]  ;;  %v215_v44 = vld [vmem:[#allocation2 + $0x128] sm:$0xff] }
  0x1c   :  { %594 = vmatpush3.msra.mxu0 %v35_v11  ;;  %629 = vmatpush3.msra.mxu1 %v127_v16  ;;  %v214_v45 = vld [vmem:[#allocation2 + $0x120] sm:$0xff]  ;;  %v213_v46 = vld [vmem:[#allocation2 + $0x118] sm:$0xff]  ;;  %v212_v52 = vld [vmem:[#allocation2 + $0x110] sm:$0xff] }
  0x1d   :  { %595 = vmatprep.subr.mxu0 %v786_v0  ;;  %630 = vmatprep.subr.mxu1 %v786_v0  ;;  %v491_v47 = vld [vmem:[#allocation2 + $0x280] ss:$0 sm:$0xff]  ;;  %v211_v53 = vld [vmem:[#allocation2 + $0x108] sm:$0xff]  ;;  %v317_v55 = vld [vmem:[#allocation2 + $0x1f8] sm:$0xff] }
  0x1e   :  { %596 = vmatpush3.msra.mxu0 %v34_v13  ;;  %631 = vmatpush3.msra.mxu1 %v126_v18  ;;  %v210_v54 = vld [vmem:[#allocation2 + $0x100] sm:$0xff]  ;;  %v316_v56 = vld [vmem:[#allocation2 + $0x1f0] sm:$0xff]  ;;  %v315_v57 = vld [vmem:[#allocation2 + $0x1e8] sm:$0xff] }
  0x1f   :  { %597 = vmatprep.subr.mxu0 %v786_v0  ;;  %632 = vmatprep.subr.mxu1 %v786_v0  ;;  %v314_v58 = vld [vmem:[#allocation2 + $0x1e0] sm:$0xff]  ;;  %v313_v59 = vld [vmem:[#allocation2 + $0x1d8] sm:$0xff]  ;;  %v312_v60 = vld [vmem:[#allocation2 + $0x1d0] sm:$0xff] }
  0x20   :  { %598 = vmatpush3.msra.mxu0 %v33_v15  ;;  %633 = vmatpush3.msra.mxu1 %v125_v20  ;;  %v311_v61 = vld [vmem:[#allocation2 + $0x1c8] sm:$0xff]  ;;  %v310_v62 = vld [vmem:[#allocation2 + $0x1c0] sm:$0xff]  ;;  %v309_v63 = vld [vmem:[#allocation2 + $0x1b8] sm:$0xff] }
  0x21   :  { %599 = vmatprep.subr.mxu0 %v786_v0  ;;  %634 = vmatprep.subr.mxu1 %v786_v0  ;;  %v308_v1 = vld [vmem:[#allocation2 + $0x1b0] sm:$0xff]  ;;  %v307_v2 = vld [vmem:[#allocation2 + $0x1a8] sm:$0xff]  ;;  %v306_v3 = vld [vmem:[#allocation2 + $0x1a0] sm:$0xff] }
  0x22   :  { %600 = vmatpush3.msra.mxu0 %v32_v17  ;;  %635 = vmatpush3.msra.mxu1 %v124_v22  ;;  %v305_v4 = vld [vmem:[#allocation2 + $0x198] sm:$0xff]  ;;  %v492_v5 = vld [vmem:[#allocation2 + $0x281] ss:$0 sm:$0xff]  ;;  %v304_v10 = vld [vmem:[#allocation2 + $0x190] sm:$0xff] }
  0x23   :  { %601 = vmatprep.subr.mxu0 %v786_v0  ;;  %636 = vmatprep.subr.mxu1 %v786_v0  ;;  %v303_v11 = vld [vmem:[#allocation2 + $0x188] sm:$0xff]  ;;  %v302_v12 = vld [vmem:[#allocation2 + $0x180] sm:$0xff]  ;;  %v409_v13 = vld [vmem:[#allocation2 + $0x278] sm:$0xff] }
  0x24   :  { %602 = vmatpush3.msra.mxu0 %v31_v19  ;;  %637 = vmatpush3.msra.mxu1 %v123_v24  ;;  %v408_v14 = vld [vmem:[#allocation2 + $0x270] sm:$0xff]  ;;  %v407_v15 = vld [vmem:[#allocation2 + $0x268] sm:$0xff]  ;;  %v406_v16 = vld [vmem:[#allocation2 + $0x260] sm:$0xff] }
  0x25   :  { %603 = vmatprep.subr.mxu0 %v786_v0  ;;  %638 = vmatprep.subr.mxu1 %v786_v0  ;;  %v405_v17 = vld [vmem:[#allocation2 + $0x258] sm:$0xff]  ;;  %v404_v18 = vld [vmem:[#allocation2 + $0x250] sm:$0xff]  ;;  %v403_v19 = vld [vmem:[#allocation2 + $0x248] sm:$0xff] }
  0x26   :  { %604 = vmatpush3.msra.mxu0 %v30_v21  ;;  %639 = vmatpush3.msra.mxu1 %v122_v26  ;;  %v402_v20 = vld [vmem:[#allocation2 + $0x240] sm:$0xff]  ;;  %v401_v21 = vld [vmem:[#allocation2 + $0x238] sm:$0xff]  ;;  %v400_v22 = vld [vmem:[#allocation2 + $0x230] sm:$0xff] }
  0x27   :  { %605 = vmatprep.subr.mxu0 %v786_v0  ;;  %640 = vmatprep.subr.mxu1 %v786_v0  ;;  %v398_v24 = vld [vmem:[#allocation2 + $0x220] sm:$0xff] }
  0x28   :  { %606 = vmatpush3.msra.mxu0 %v29_v23  ;;  %641 = vmatpush3.msra.mxu1 %v121_v28  ;;  %v399_v23 = vld [vmem:[#allocation2 + $0x228] sm:$0xff]  ;;  %v493_v26 = vld [vmem:[#allocation2 + $0x282] ss:$0 sm:$0xff] }
  0x29   :  { %607 = vmatprep.subr.mxu0 %v786_v0  ;;  %642 = vmatprep.subr.mxu1 %v786_v0 }
  0x2a   :  { %608 = vmatpush3.msra.mxu0 %v28_v25  ;;  %643 = vmatpush3.msra.mxu1 %v120_v31  ;;  %v397_v25 = vld [vmem:[#allocation2 + $0x218] sm:$0xff]  ;;  %v396_v31 = vld [vmem:[#allocation2 + $0x210] sm:$0xff] }
  0x2b   :  { %609 = vmatprep.subr.mxu0 %v786_v0  ;;  %644 = vmatprep.subr.mxu1 %v786_v0 }
  0x2c   :  { %610 = vmatpush3.msra.mxu0 %v27_v27  ;;  %645 = vmatpush3.msra.mxu1 %v119_v32  ;;  %v395_v32 = vld [vmem:[#allocation2 + $0x208] sm:$0xff] }
  0x2d   :  { %611 = vmatprep.subr.mxu0 %v786_v0  ;;  %646 = vmatprep.subr.mxu1 %v786_v0 }
  0x2e   :  { %612 = vmatpush3.msra.mxu0 %v26_v29  ;;  %647 = vmatpush3.msra.mxu1 %v118_v33  ;;  %v394_v33 = vld [vmem:[#allocation2 + $0x200] sm:$0xff] }
  0x2f   :  { %614 = vmatmul.mubr.f32.vlgmr.msra.gmra.mxu0 %v25_v30  ;;  %651 = vmatprep.subr.mxu0 %v786_v0 }
  0x30   :  { %683 = vmatprep.mubr.msk.f32.mxu0 %vm787_vm0, %v786_v0  ;;  %686 = vmatprep.subr.mxu1 %v786_v0 }
  0x31   :  { %652 = vmatpush3.msra.mxu0 %v225_v34  ;;  %v494_v34 = vld [vmem:[#allocation2 + $0x283] ss:$0 sm:$0xff] }
  0x32   :  { %653 = vmatprep.subr.mxu0 %v786_v0 }
  0x33   :  { %654 = vmatpush3.msra.mxu0 %v224_v35 }
  0x34   :  { %655 = vmatprep.subr.mxu0 %v786_v0 }
  0x35   :  { %656 = vmatpush3.msra.mxu0 %v223_v36 }
  0x36   :  { %657 = vmatprep.subr.mxu0 %v786_v0 }
  0x37   :  { %658 = vmatpush3.msra.mxu0 %v222_v37 }
  0x38   :  { %659 = vmatprep.subr.mxu0 %v786_v0 }
  0x39   :  { %660 = vmatpush3.msra.mxu0 %v221_v38 }
  0x3a   :  { %661 = vmatprep.subr.mxu0 %v786_v0 }
  0x3b   :  { %662 = vmatpush3.msra.mxu0 %v220_v39  ;;  %v495_v39 = vld [vmem:[#allocation2 + $0x284] ss:$0 sm:$0xff] }
  0x3c   :  { %663 = vmatprep.subr.mxu0 %v786_v0 }
  0x3d   :  { %664 = vmatpush3.msra.mxu0 %v219_v40 }
  0x3e   :  { %665 = vmatprep.subr.mxu0 %v786_v0 }
  0x3f   :  { %666 = vmatpush3.msra.mxu0 %v218_v41 }
  0x40   :  { %667 = vmatprep.subr.mxu0 %v786_v0 }
  0x41   :  { %668 = vmatpush3.msra.mxu0 %v217_v42 }
  0x42   :  { %669 = vmatprep.subr.mxu0 %v786_v0 }
  0x43   :  { %670 = vmatpush3.msra.mxu0 %v216_v43 }
  0x44   :  { %671 = vmatprep.subr.mxu0 %v786_v0 }
  0x45   :  { %672 = vmatpush3.msra.mxu0 %v215_v44 }
  0x46   :  { %673 = vmatprep.subr.mxu0 %v786_v0 }
  0x47   :  { %674 = vmatpush3.msra.mxu0 %v214_v45 }
  0x48   :  { %675 = vmatprep.subr.mxu0 %v786_v0 }
  0x49   :  { %676 = vmatpush3.msra.mxu0 %v213_v46 }
  0x4a   :  { %677 = vmatprep.subr.mxu0 %v786_v0 }
  0x4b   :  { %678 = vmatpush3.msra.mxu0 %v212_v52 }
  0x4c   :  { %679 = vmatprep.subr.mxu0 %v786_v0 }
  0x4d   :  { %680 = vmatpush3.msra.mxu0 %v211_v53 }
  0x4e   :  { %681 = vmatprep.subr.mxu0 %v786_v0 }
  0x4f   :  { %682 = vmatpush3.msra.mxu0 %v210_v54 }
  0x50   :  { %721 = vmatprep.subr.mxu0 %v786_v0 }
  0xef   :  { %v113_v48 = vpop.f32.mrf.mxu0 }
  0xf0   :  { %v114_v49 = vadd.f32 %v491_v47, %v113_v48 }
  0xf1   :  { %v615_v50 = vpop.f32.mrf.mxu0 }
  0xf2   :  { %v117_v51 = vmax.f32 %v114_v49, 0.0 }
  0xf4   :  { %649 = vmatmul.mubr.f32.vlgmr.msra.gmra.mxu1 %v117_v51 }
  0xf5   :  { %718 = vmatprep.mubr.msk.f32.mxu1 %vm787_vm0, %v786_v0  ;;  %687 = vmatpush3.msra.mxu1 %v317_v55 }
  0xf6   :  { %688 = vmatprep.subr.mxu1 %v786_v0 }
  0xf7   :  { %689 = vmatpush3.msra.mxu1 %v316_v56 }
  0xf8   :  { %690 = vmatprep.subr.mxu1 %v786_v0 }
  0xf9   :  { %691 = vmatpush3.msra.mxu1 %v315_v57 }
  0xfa   :  { %692 = vmatprep.subr.mxu1 %v786_v0 }
  0xfb   :  { %693 = vmatpush3.msra.mxu1 %v314_v58 }
  0xfc   :  { %694 = vmatprep.subr.mxu1 %v786_v0 }
  0xfd   :  { %695 = vmatpush3.msra.mxu1 %v313_v59 }
  0xfe   :  { %696 = vmatprep.subr.mxu1 %v786_v0 }
  0xff   :  { %697 = vmatpush3.msra.mxu1 %v312_v60 }
 0x100   :  { %698 = vmatprep.subr.mxu1 %v786_v0 }
 0x101   :  { %699 = vmatpush3.msra.mxu1 %v311_v61 }
 0x102   :  { %700 = vmatprep.subr.mxu1 %v786_v0 }
 0x103   :  { %701 = vmatpush3.msra.mxu1 %v310_v62 }
 0x104   :  { %702 = vmatprep.subr.mxu1 %v786_v0 }
 0x105   :  { %703 = vmatpush3.msra.mxu1 %v309_v63 }
 0x106   :  { %704 = vmatprep.subr.mxu1 %v786_v0 }
 0x107   :  { %705 = vmatpush3.msra.mxu1 %v308_v1 }
 0x108   :  { %706 = vmatprep.subr.mxu1 %v786_v0 }
 0x109   :  { %707 = vmatpush3.msra.mxu1 %v307_v2 }
 0x10a   :  { %708 = vmatprep.subr.mxu1 %v786_v0 }
 0x10b   :  { %709 = vmatpush3.msra.mxu1 %v306_v3 }
 0x10c   :  { %710 = vmatprep.subr.mxu1 %v786_v0 }
 0x10d   :  { %711 = vmatpush3.msra.mxu1 %v305_v4 }
 0x10e   :  { %712 = vmatprep.subr.mxu1 %v786_v0 }
 0x10f   :  { %713 = vmatpush3.msra.mxu1 %v304_v10 }
 0x110   :  { %714 = vmatprep.subr.mxu1 %v786_v0 }
 0x111   :  { %715 = vmatpush3.msra.mxu1 %v303_v11 }
 0x112   :  { %716 = vmatprep.subr.mxu1 %v786_v0 }
 0x113   :  { %717 = vmatpush3.msra.mxu1 %v302_v12 }
 0x1b4   :  { %v205_v6 = vpop.f32.mrf.mxu1 }
 0x1b5   :  { %v206_v7 = vadd.f32 %v492_v5, %v205_v6 }
 0x1b6   :  { %v650_v8 = vpop.f32.mrf.mxu1 }
 0x1b7   :  { %v209_v9 = vmax.f32 %v206_v7, 0.0 }
 0x1b9   :  { %684 = vmatmul.mubr.f32.vlgmr.msra.gmra.mxu0 %v209_v9 }
 0x1ba   :  { %753 = vmatprep.mubr.msk.f32.mxu0 %vm787_vm0, %v786_v0  ;;  %722 = vmatpush3.msra.mxu0 %v409_v13 }
 0x1bb   :  { %723 = vmatprep.subr.mxu0 %v786_v0 }
 0x1bc   :  { %724 = vmatpush3.msra.mxu0 %v408_v14 }
 0x1bd   :  { %725 = vmatprep.subr.mxu0 %v786_v0 }
 0x1be   :  { %726 = vmatpush3.msra.mxu0 %v407_v15 }
 0x1bf   :  { %727 = vmatprep.subr.mxu0 %v786_v0 }
 0x1c0   :  { %728 = vmatpush3.msra.mxu0 %v406_v16 }
 0x1c1   :  { %729 = vmatprep.subr.mxu0 %v786_v0 }
 0x1c2   :  { %730 = vmatpush3.msra.mxu0 %v405_v17 }
 0x1c3   :  { %731 = vmatprep.subr.mxu0 %v786_v0 }
 0x1c4   :  { %732 = vmatpush3.msra.mxu0 %v404_v18 }
 0x1c5   :  { %733 = vmatprep.subr.mxu0 %v786_v0 }
 0x1c6   :  { %734 = vmatpush3.msra.mxu0 %v403_v19 }
 0x1c7   :  { %735 = vmatprep.subr.mxu0 %v786_v0 }
 0x1c8   :  { %736 = vmatpush3.msra.mxu0 %v402_v20 }
 0x1c9   :  { %737 = vmatprep.subr.mxu0 %v786_v0 }
 0x1ca   :  { %738 = vmatpush3.msra.mxu0 %v401_v21 }
 0x1cb   :  { %739 = vmatprep.subr.mxu0 %v786_v0 }
 0x1cc   :  { %740 = vmatpush3.msra.mxu0 %v400_v22 }
 0x1cd   :  { %741 = vmatprep.subr.mxu0 %v786_v0 }
 0x1ce   :  { %742 = vmatpush3.msra.mxu0 %v399_v23 }
 0x1cf   :  { %743 = vmatprep.subr.mxu0 %v786_v0 }
 0x1d0   :  { %744 = vmatpush3.msra.mxu0 %v398_v24 }
 0x1d1   :  { %745 = vmatprep.subr.mxu0 %v786_v0 }
 0x1d2   :  { %746 = vmatpush3.msra.mxu0 %v397_v25 }
 0x1d3   :  { %747 = vmatprep.subr.mxu0 %v786_v0 }
 0x1d4   :  { %748 = vmatpush3.msra.mxu0 %v396_v31 }
 0x1d5   :  { %749 = vmatprep.subr.mxu0 %v786_v0 }
 0x1d6   :  { %750 = vmatpush3.msra.mxu0 %v395_v32 }
 0x1d7   :  { %751 = vmatprep.subr.mxu0 %v786_v0 }
 0x1d8   :  { %752 = vmatpush3.msra.mxu0 %v394_v33 }
 0x279   :  { %v297_v27 = vpop.f32.mrf.mxu0 }
 0x27a   :  { %v298_v28 = vadd.f32 %v493_v26, %v297_v27 }
 0x27b   :  { %v685_v29 = vpop.f32.mrf.mxu0 }
 0x27c   :  { %v301_v30 = vmax.f32 %v298_v28, 0.0 }
 0x27e   :  { %719 = vmatmul.mubr.f32.vlgmr.msra.gmra.mxu1 %v301_v30 }
 0x33e   :  { %v389_v35 = vpop.f32.mrf.mxu1 }
 0x33f   :  { %v390_v36 = vadd.f32 %v494_v34, %v389_v35 }
 0x340   :  { %v720_v37 = vpop.f32.mrf.mxu1 }
 0x341   :  { %v393_v38 = vmax.f32 %v390_v36, 0.0 }
 0x343   :  { %754 = vmatmul.mubr.f32.vlgmr.msra.gmra.mxu0 %v393_v38 }
 0x403   :  { %v481_v40 = vpop.f32.mrf.mxu0 }
 0x404   :  { %v482_v41 = vadd.f32 %v495_v39, %v481_v40 }
 0x405   :  { %v755_v42 = vpop.f32.mrf.mxu0 }
 0x406   :  { %485 = vst [vmem:[%s904_s2] sm:$0xff] %v482_v41 }
 0x407   :  { %490 = vsyncpa [#allocation3], 1 }

</bundles_post_ra>
